<compile_context>
chip_gen: v7x
topology: tpu7x:2x2x1
jax: 0.10.0
libtpu: 0.0.40
codegen_flags: <defaults>
</compile_context>

<pallas_src>
import math

import jax
import jax.numpy as jnp
from jax.experimental import pallas as pl
from jax.experimental.pallas import tpu as pltpu


def _attention_kernel(q_ref, k_ref, v_ref, mask_ref, o_ref):
    # q_ref/k_ref/v_ref: (hps, S, D) slab of heads; mask_ref: (S, S) additive.
    q = q_ref[...]
    k = k_ref[...]
    v = v_ref[...]

    d = q.shape[-1]
    scale = 1.0 / math.sqrt(d)

    # Fold the 1/sqrt(D) scale into Q, then present bf16 operands to the MXU
    # (f32 accumulation via preferred_element_type).
    qs = (q * scale).astype(jnp.bfloat16)
    kb = k.astype(jnp.bfloat16)

    # Batched score matmul contracting the last dims -- no explicit K^T.
    qk = jnp.einsum("bqd,bkd->bqk", qs, kb,
                    preferred_element_type=jnp.float32)

    # Additive mask (module semantics: qk = qk + mask), broadcast over heads.
    qk = qk + mask_ref[...][None, :, :]

    # Numerically stable softmax; normalization deferred to after PV matmul.
    row_max = jnp.max(qk, axis=-1, keepdims=True)
    p = jnp.exp(qk - row_max)                       # unnormalized probs
    denom = jnp.sum(p, axis=-1, keepdims=True)

    acc = jnp.einsum("bqk,bkd->bqd",
                     p.astype(jnp.bfloat16), v.astype(jnp.bfloat16),
                     preferred_element_type=jnp.float32)

    out = acc * pl.reciprocal(denom, approx=True)   # EUP vrcp (free slot)
    o_ref[...] = out.astype(o_ref.dtype)


def _heads_per_step(bh, target=8):
    """Largest divisor of BH that is <= target, with >=2 grid steps if possible."""
    if bh <= 1:
        return 1
    hps = min(target, bh // 2)   # >=2 steps -> DMA/compute overlap + v7x 2-TC split
    while bh % hps:
        hps -= 1
    return hps


def attention(q, k, v, mask):
    """q, k, v: (B, H, S, D) float32; mask: (1, S, S) float32 (additive)."""
    B, H, S, D = q.shape
    BH = B * H
    q2 = q.reshape(BH, S, D)
    k2 = k.reshape(BH, S, D)
    v2 = v.reshape(BH, S, D)
    mask2 = mask.reshape(S, S)

    hps = _heads_per_step(BH)
    grid = (BH // hps,)

    out = pl.pallas_call(
        _attention_kernel,
        out_shape=jax.ShapeDtypeStruct((BH, S, D), q.dtype),
        grid_spec=pltpu.PrefetchScalarGridSpec(
            num_scalar_prefetch=0,
            grid=grid,
            in_specs=[
                pl.BlockSpec((hps, S, D), lambda i: (i, 0, 0)),   # Q
                pl.BlockSpec((hps, S, D), lambda i: (i, 0, 0)),   # K
                pl.BlockSpec((hps, S, D), lambda i: (i, 0, 0)),   # V
                pl.BlockSpec((S, S), lambda i: (0, 0)),           # mask (shared)
            ],
            out_specs=pl.BlockSpec((hps, S, D), lambda i: (i, 0, 0)),
        ),
        compiler_params=pltpu.CompilerParams(
            dimension_semantics=("parallel",)),   # no cross-step carry
    )(q2, k2, v2, mask2)

    return out.reshape(B, H, S, D)


def attention_ref(q, k, v, mask):
    d = q.shape[-1]
    qk = jnp.einsum("bhsd,bhtd->bhst", q, k) / math.sqrt(d)
    qk = qk + mask[:, None, :, :]
    p = jax.nn.softmax(qk, axis=-1)
    return jnp.einsum("bhst,bhtd->bhsd", p, v)


if __name__ == "__main__":
    # Small shapes consistent with the module's (1, 64, 56, 56) attention
    # pattern (batched heads, square S x S scores, D = last dim).
    B, H, S, D = 1, 8, 16, 16

    key = jax.random.PRNGKey(0)
    kq, kk, kv = jax.random.split(key, 3)
    Q2 = jax.random.normal(kq, (B, H, S, D), dtype=jnp.float32)
    k4 = jax.random.normal(kk, (B, H, S, D), dtype=jnp.float32)
    V5 = jax.random.normal(kv, (B, H, S, D), dtype=jnp.float32)

    # In the PyTorch source, the bool mask is .fill_(-1e9), which on a bool
    # tensor yields all-True; added to floats it becomes all-ones. Reproduce
    # that deterministic additive mask here (a softmax no-op, kept for
    # faithfulness to the module's `qk = qk + mask`).
    mask = jnp.ones((1, S, S), dtype=jnp.float32)

    out = attention(Q2, k4, V5, mask)
    out = jax.block_until_ready(out)

    ref = attention_ref(Q2, k4, V5, mask)
    assert out.shape == (B, H, S, D)
    # Tolerance accounts for bf16 MXU operands + approx EUP reciprocal.
    assert jnp.allclose(out, ref, atol=2e-2, rtol=2e-2), "mismatch vs reference"

    print("KERNEL_OK")
</pallas_src>

<mosaic_0001>
module attributes {stable_mosaic.version = 11 : i64} {
  func.func @_attention_kernel(%arg0: i32, %arg1: memref<4x16x16xf32, #tpu.memory_space<vmem>>, %arg2: memref<4x16x16xf32, #tpu.memory_space<vmem>>, %arg3: memref<4x16x16xf32, #tpu.memory_space<vmem>>, %arg4: memref<16x16xf32, #tpu.memory_space<vmem>>, %arg5: memref<4x16x16xf32, #tpu.memory_space<vmem>>) attributes {dimension_semantics = [#tpu.dimension_semantics<parallel>], iteration_bounds = array<i64: 2>, scalar_prefetch = 0 : i64, scratch_operands = 0 : i64, tpu.core_type = #tpu.core_type<tc>, window_params = [{transform_indices = @transform_0, window_bounds = array<i64: 4, 16, 16>}, {transform_indices = @transform_1, window_bounds = array<i64: 4, 16, 16>}, {transform_indices = @transform_2, window_bounds = array<i64: 4, 16, 16>}, {pipeline_mode = #tpu.pipeline_mode<synchronous>, transform_indices = @transform_3, window_bounds = array<i64: 16, 16>}, {transform_indices = @transform_4, window_bounds = array<i64: 4, 16, 16>}]} {
    %c0 = arith.constant 0 : index
    %c0_0 = arith.constant 0 : index
    %c0_1 = arith.constant 0 : index
    %0 = vector.load %arg1[%c0, %c0_0, %c0_1] : memref<4x16x16xf32, #tpu.memory_space<vmem>>, vector<4x16x16xf32>
    %c0_2 = arith.constant 0 : index
    %c0_3 = arith.constant 0 : index
    %c0_4 = arith.constant 0 : index
    %1 = vector.load %arg2[%c0_2, %c0_3, %c0_4] : memref<4x16x16xf32, #tpu.memory_space<vmem>>, vector<4x16x16xf32>
    %c0_5 = arith.constant 0 : index
    %c0_6 = arith.constant 0 : index
    %c0_7 = arith.constant 0 : index
    %2 = vector.load %arg3[%c0_5, %c0_6, %c0_7] : memref<4x16x16xf32, #tpu.memory_space<vmem>>, vector<4x16x16xf32>
    %cst = arith.constant 2.500000e-01 : f32
    %3 = vector.broadcast %cst : f32 to vector<4x16x16xf32>
    %4 = arith.mulf %0, %3 : vector<4x16x16xf32>
    %5 = arith.truncf %4 : vector<4x16x16xf32> to vector<4x16x16xbf16>
    %6 = arith.truncf %1 : vector<4x16x16xf32> to vector<4x16x16xbf16>
    "tpu.trace_start"() <{level = 10 : i32, message = "bqd,bkd->bqk"}> : () -> ()
    %cst_8 = arith.constant dense<0.000000e+00> : vector<4x16x16xf32>
    %7 = tpu.matmul %5, %6, %cst_8 {dimension_numbers = #tpu.dot_dimension_numbers<[2], [2], [1], [1], [0, 0, 0, 1, 1, 1], [0], [0]>} : vector<4x16x16xbf16>, vector<4x16x16xbf16>, vector<4x16x16xf32> -> vector<4x16x16xf32>
    "tpu.trace_stop"() : () -> ()
    %c0_9 = arith.constant 0 : index
    %c0_10 = arith.constant 0 : index
    %8 = vector.load %arg4[%c0_9, %c0_10] : memref<16x16xf32, #tpu.memory_space<vmem>>, vector<16x16xf32>
    %9 = vector.shape_cast %8 : vector<16x16xf32> to vector<1x16x16xf32>
    %10 = vector.broadcast %9 : vector<1x16x16xf32> to vector<4x16x16xf32>
    %11 = arith.addf %7, %10 : vector<4x16x16xf32>
    %cst_11 = arith.constant dense<0xFF800000> : vector<4x16xf32>
    %12 = vector.multi_reduction <maximumf>, %11, %cst_11 [2] : vector<4x16x16xf32> to vector<4x16xf32>
    %13 = vector.shape_cast %12 : vector<4x16xf32> to vector<4x16x1xf32>
    %14 = vector.broadcast %13 : vector<4x16x1xf32> to vector<4x16x16xf32>
    %15 = arith.subf %11, %14 : vector<4x16x16xf32>
    %16 = math.exp %15 : vector<4x16x16xf32>
    %cst_12 = arith.constant dense<0.000000e+00> : vector<4x16xf32>
    %17 = vector.multi_reduction <add>, %16, %cst_12 [2] : vector<4x16x16xf32> to vector<4x16xf32>
    %18 = vector.shape_cast %17 : vector<4x16xf32> to vector<4x16x1xf32>
    %19 = arith.truncf %16 : vector<4x16x16xf32> to vector<4x16x16xbf16>
    %20 = arith.truncf %2 : vector<4x16x16xf32> to vector<4x16x16xbf16>
    "tpu.trace_start"() <{level = 10 : i32, message = "bqk,bkd->bqd"}> : () -> ()
    %cst_13 = arith.constant dense<0.000000e+00> : vector<4x16x16xf32>
    %21 = tpu.matmul %19, %20, %cst_13 {dimension_numbers = #tpu.dot_dimension_numbers<[2], [1], [1], [2], [0, 0, 0, 1, 1, 2], [0], [0]>} : vector<4x16x16xbf16>, vector<4x16x16xbf16>, vector<4x16x16xf32> -> vector<4x16x16xf32>
    "tpu.trace_stop"() : () -> ()
    %22 = tpu.reciprocal %18 {approx = true} : vector<4x16x1xf32> -> vector<4x16x1xf32>
    %23 = vector.broadcast %22 : vector<4x16x1xf32> to vector<4x16x16xf32>
    %24 = arith.mulf %21, %23 : vector<4x16x16xf32>
    %c0_14 = arith.constant 0 : index
    %c0_15 = arith.constant 0 : index
    %c0_16 = arith.constant 0 : index
    %25 = vector.load %arg5[%c0_14, %c0_15, %c0_16] : memref<4x16x16xf32, #tpu.memory_space<vmem>>, vector<4x16x16xf32>
    tpu.vector_store %arg5[%c0_14, %c0_15, %c0_16], %24 {strides = array<i32>} : memref<4x16x16xf32, #tpu.memory_space<vmem>>, vector<4x16x16xf32>,
    return
  }
  func.func @transform_0(%arg0: i32) -> (i32, i32, i32) {
    %c0_i32 = arith.constant 0 : i32
    %c0_i32_0 = arith.constant 0 : i32
    %c0_i32_1 = arith.constant 0 : i32
    return %arg0, %c0_i32, %c0_i32_0 : i32, i32, i32
  }
  func.func @transform_1(%arg0: i32) -> (i32, i32, i32) {
    %c0_i32 = arith.constant 0 : i32
    %c0_i32_0 = arith.constant 0 : i32
    %c0_i32_1 = arith.constant 0 : i32
    return %arg0, %c0_i32, %c0_i32_0 : i32, i32, i32
  }
  func.func @transform_2(%arg0: i32) -> (i32, i32, i32) {
    %c0_i32 = arith.constant 0 : i32
    %c0_i32_0 = arith.constant 0 : i32
    %c0_i32_1 = arith.constant 0 : i32
    return %arg0, %c0_i32, %c0_i32_0 : i32, i32, i32
  }
  func.func @transform_3(%arg0: i32) -> (i32, i32) {
    %c0_i32 = arith.constant 0 : i32
    %c0_i32_0 = arith.constant 0 : i32
    %c0_i32_1 = arith.constant 0 : i32
    return %c0_i32, %c0_i32_0 : i32, i32
  }
  func.func @transform_4(%arg0: i32) -> (i32, i32, i32) {
    %c0_i32 = arith.constant 0 : i32
    %c0_i32_0 = arith.constant 0 : i32
    %c0_i32_1 = arith.constant 0 : i32
    return %arg0, %c0_i32, %c0_i32_0 : i32, i32, i32
  }
}

</mosaic_0001>

<bundles_post_ra>
// kernel: tpu_custom_call.1
= control target key start
LH: loop header
LB: loop body
LE: loop exit
PB: predicated region body
PF: predicated region fallthrough
CT: control target
= control target key end

     0   :  { %s1807_s0 = inlined_call_operand.hbm [shape: f32[8,16,16], index: 0, kind: input, shape index: {}]   ;;  %s1808_s1 = inlined_call_operand.hbm [shape: f32[8,16,16], index: 1, kind: input, shape index: {}]   ;;  %s1809_s2 = inlined_call_operand.hbm [shape: f32[8,16,16], index: 2, kind: input, shape index: {}]   ;;  %s1810_s3 = inlined_call_operand.hbm [shape: f32[16,16], index: 3, kind: input, shape index: {}]   ;;  %s1811_s4 = inlined_call_operand.hbm [shape: f32[8,16,16], index: 4, kind: output, shape index: {}]  }
   0x1   :  { %1830 = sst [smem:[#allocation20_spill]] %s1807_s0 }
   0x2   :  { %1831 = sst [smem:[#allocation21_spill]] %s1808_s1 }
   0x3   :  { %9 = vsyncpa [#allocation3], 0 }
   0x4   :  { %11 = vsyncpa [#allocation3 + $0x1], 0 }
   0x5   :  { %12 = vsyncpa [#allocation6], 0 }
   0x6   :  { %14 = vsyncpa [#allocation6 + $0x1], 0 }
   0x7   :  { %15 = vsyncpa [#allocation9], 0 }
   0x8   :  { %16 = vsyncpa [#allocation4], 0 }
   0x9   :  { %18 = vsyncpa [#allocation4 + $0x1], 0  ;;  %s1411_s15 = smov 0   ;;  %s1413_s16 = smov 0  }
   0xa   :  { %s1415_s17 = smov 0   ;;  %s1417_s18 = smov 0  }
   0xb LB: > { %1832 = sst [smem:[#allocation15_spill]] %s1369_s17  ;;  %s1432_s19 = sadd.s32 1, %s1373_s18   ;;  %s1373_s18 = sphi %s1417_s18, %s1861_s18   ;;  %s1369_s17 = sphi %s1415_s17, %s1863_s17   ;;  %s1365_s16 = sphi %s1413_s16, %s1865_s16   ;;  %s1361_s15 = sphi %s1411_s15, %s1864_s15  }
   0xc   : > { %1833 = sst [smem:[#allocation16_spill]] %s1373_s18  ;;  %s31_s20 = sadd.s32 1, %s1369_s17 }
   0xd   : > { %1834 = sst [smem:[#allocation17_spill]] %s1432_s19  ;;  %s28_s21 = ssub.s32 %s1373_s18, %s1432_s19 }
   0xe   : > { %p1812_p0 = scmp.ne.s32.totalorder %s1369_s17, %s1365_s16  ;;  %p29_p1 = scmp.eq.s32.totalorder %s28_s21, 0 }
   0xf   : > { %p39_p2 = scmp.eq.s32.totalorder %s1373_s18, 0  ;;  %p1107_p5 = scmp.lt.s32.totalorder %s1373_s18, 2 }
  0x10   : > { %s1441_s22 = scalar_select %p29_p1, %s1369_s17, %s31_s20  }
  0x11   : > { %p40_p3 = por %p39_p2, %p1812_p0  ;;  %s180_s23 = sand.u32 1, %s1369_s17  }
  0x12   : > { %1835 = sst [smem:[#allocation18_spill]] %s1441_s22  ;;  %s1451_s24 = sshll.u32 %s180_s23, 6 }
  0x13   : > { %s1454_s25 = sshll.u32 %s1373_s18, 10  ;;  %p1456_p6 = pnand %p1107_p5, %p40_p3 }
  0x14   : > { %s202_s27 = sand.u32 1, %s1373_s18   ;;  %s1837_s1 = sld [smem:[#allocation21_spill]] }
  0x15   : > { %s1836_s26 = scalar_select %p1456_p6, 1, 0 }
  0x16   : > { %s206_s5 = scalar_lea.vmem [#allocation5], %s1451_s24  ;;  %s1470_s7 = scalar_lea.sflag [#allocation6], %s202_s27 }
  0x17   : > { %s214_s6 = sshll.u32 %s206_s5, 4  ;;  %p1476_p8 = pneg %p1456_p6  ;;  %s1468_s6 = int_to_ptr.vmem [resolvable:$true] %s214_s6 }
  0x19   : > { %s1838_s9 = scalar_select %p1476_p8, 1, 0 }
  0x1a   : > { %s1465_s30 = scalar_lea.hbm %s1837_s1, %s1454_s25  ;;  %s1186_s12 = scalar_lea.hbm %s1837_s1, 2048 }
  0x1b   : > { %s1181_s8 = scalar_lea.hbm %s1465_s30, 1024  ;;  %p1187_p11 = scmp.lt.u32.totalorder %s1465_s30, %s1837_s1 }
  0x1c   : > { %p1182_p7 = scmp.ne.s32.totalorder %s1465_s30, %s1181_s8  ;;  %p1188_p12 = scmp.lt.u32.totalorder %s1186_s12, %s1181_s8 }
  0x1d   : > { %p1190_p1 = scmp.lt.u32.totalorder %s1181_s8, %s1465_s30 }
  0x1e   : > { %p1184_p9 = pnand %p1476_p8, %p1182_p7  ;;  %p1189_p13 = por %p1188_p12, %p1187_p11 }
  0x20   : > { %p1185_p10 = pneg %p1184_p9  ;;  %p1191_p2 = por %p1190_p1, %p1189_p13 }
  0x22   : > { %p1192_p3 = pnand %p1191_p2, %p1185_p10 }
  0x24   : > { %1195 = shalt.err (!%p1192_p3)
}
  0x25   : > { %s1196_s20 = scalar_lea.vmem %s1468_s6, 1024  ;;  %s1375_s21 = smov [#allocation5]  }
  0x26   : > { %p1197_p5 = scmp.ne.s32.totalorder %s1468_s6, %s1196_s20  ;;  %s1201_s27 = sshll.u32 %s1375_s21, 4  ;;  %s1202_s27 = int_to_ptr.vmem [resolvable:$false] %s1201_s27 }
  0x27   : > { %s1203_s28 = scalar_lea.vmem %s1202_s27, 2048  ;;  %p1204_p4 = scmp.lt.s32.totalorder %s1468_s6, %s1202_s27 }
  0x28   : > { %p1199_p7 = pnand %p1197_p5, %p1476_p8  ;;  %p1205_p0 = scmp.lt.s32.totalorder %s1203_s28, %s1196_s20 }
  0x2a   : > { %p1200_p9 = pneg %p1199_p7  ;;  %p1206_p11 = por %p1205_p0, %p1204_p4 }
  0x2c   : > { %p1207_p12 = pnand %p1206_p11, %p1200_p9 }
  0x2e   : > { %1210 = shalt.err (!%p1207_p12)
}
  0x2f   : > { %s1813_s29 = smov 128   ;;  %s1815_s5 = smov 8  }
  0x30   : > { %1098 = dma.hbm_to_vmem [thread:$0]  (!%p1456_p6), %s1465_s30, 1024, %s1468_s6, %s1470_s7, %s1813_s29, %s1813_s29, %s1815_s5  }
  0x31   : > { %s1504_s8 = sadd.s32 4294967295, %s1373_s18   ;;  %s968_s10 = sadd.s32 4294967294, %s1373_s18  }
  0x32   : > { %p44_p0 = scmp.ne.s32.totalorder %s1365_s16, %s1361_s15  ;;  %p1817_p4 = scmp.eq.s32.totalorder %s1504_s8, 0 }
  0x33   : > { %p141_p10 = scmp.eq.s32.totalorder %s1504_s8, 1  ;;  %p147_p13 = scmp.eq.s32.totalorder %s968_s10, 1 }
  0x34   : > { %p1513_p1 = por %p1817_p4, %p44_p0  ;;  %p969_p2 = scmp.ge.s32.totalorder %s1373_s18, 1 }
  0x35   : > { %p1840_p3 = scmp.ne.s32.totalorder %s1369_s17, %s1365_s16  ;;  %p1525_p7 = por %p147_p13, %p44_p0 }
  0x36   : > { %s1839_s11 = scalar_select %p1513_p1, 1, 0 }
  0x37   : > { %p1521_p5 = por %p141_p10, %p1840_p3  ;;  %p154_p9 = scmp.lt.s32.totalorder %s1373_s18, 3 }
  0x38   : > { %s1842_s6 = scalar_select %p1525_p7, 1, 0 }
  0x39   : > { %s1841_s30 = scalar_select %p1521_p5, 1, 0 }
  0x3a   : > { %1843 = sst [smem:[#allocation19_spill]] %s1842_s6  ;;  %p1530_p11 = pnand %p969_p2, %p154_p9 }
  0x3b   : > { %s1378_s13 = smov [#allocation8]   ;;  %s1845_s0 = sld [smem:[#allocation20_spill]] }
  0x3c   : > { %s1844_s12 = scalar_select %p1530_p11, 1, 0 }
  0x3d   : > { %s166_s14 = sshll.u32 %s1378_s13, 4  ;;  %p1088_p12 = pneg %p1530_p11  ;;  %s1534_s14 = int_to_ptr.vmem [resolvable:$true] %s166_s14 }
  0x3e   : > { %s184_s28 = scalar_lea.vmem [#allocation2], %s1451_s24  ;;  %s1555_s13 = scalar_lea.sflag [#allocation3], %s180_s23 }
  0x3f   : > { %s192_s10 = sshll.u32 %s184_s28, 4  ;;  %p1547_p0 = pnand %p1088_p12, %p1817_p4  ;;  %s1551_s10 = int_to_ptr.vmem [resolvable:$true] %s192_s10 }
  0x41   : > { %s1542_s27 = scalar_lea.hbm %s1845_s0, %s1454_s25  ;;  %s1216_s1 = scalar_lea.hbm %s1845_s0, 2048 }
  0x42   : > { %s1846_s29 = scalar_select %p1547_p0, 1, 0 }
  0x43   : > { %s1211_s5 = scalar_lea.hbm %s1542_s27, 1024  ;;  %p1217_p3 = scmp.lt.u32.totalorder %s1542_s27, %s1845_s0 }
  0x44   : > { %p1212_p10 = scmp.ne.s32.totalorder %s1542_s27, %s1211_s5  ;;  %p1218_p9 = scmp.lt.u32.totalorder %s1216_s1, %s1211_s5 }
  0x45   : > { %p1220_p4 = scmp.lt.u32.totalorder %s1211_s5, %s1542_s27 }
  0x46   : > { %p1214_p13 = pnand %p1212_p10, %p1476_p8  ;;  %p1219_p12 = por %p1218_p9, %p1217_p3 }
  0x48   : > { %p1215_p2 = pneg %p1214_p13  ;;  %p1221_p7 = por %p1220_p4, %p1219_p12 }
  0x4a   : > { %p1222_p5 = pnand %p1221_p7, %p1215_p2 }
  0x4c   : > { %1225 = shalt.err (!%p1222_p5)
}
  0x4d   : > { %s1226_s23 = scalar_lea.vmem %s1551_s10, 1024  ;;  %s1379_s20 = smov [#allocation2]  }
  0x4e   : > { %p1227_p10 = scmp.ne.s32.totalorder %s1551_s10, %s1226_s23  ;;  %s1231_s21 = sshll.u32 %s1379_s20, 4  ;;  %s1232_s21 = int_to_ptr.vmem [resolvable:$false] %s1231_s21 }
  0x4f   : > { %s1233_s22 = scalar_lea.vmem %s1232_s21, 2048  ;;  %p1234_p11 = scmp.lt.s32.totalorder %s1551_s10, %s1232_s21 }
  0x50   : > { %p1229_p13 = pnand %p1227_p10, %p1476_p8  ;;  %p1235_p0 = scmp.lt.s32.totalorder %s1233_s22, %s1226_s23 }
  0x52   : > { %p1230_p1 = pneg %p1229_p13  ;;  %p1236_p3 = por %p1235_p0, %p1234_p11 }
  0x54   : > { %p1237_p9 = pnand %p1236_p3, %p1230_p1 }
  0x56   : > { %1240 = shalt.err (!%p1237_p9)
}
  0x57   : > { %s1847_s1 = smov 8   ;;  %s1848_s5 = smov 128  }
  0x58   : > { %1095 = dma.hbm_to_vmem [thread:$0]  (!%p1456_p6), %s1542_s27, 1024, %s1551_s10, %s1555_s13, %s1848_s5, %s1848_s5, %s1847_s1  }
  0x59   : > { %s1586_s0 = scalar_lea.hbm %s1809_s2, %s1454_s25  ;;  %s1241_s22 = scalar_lea.hbm %s1810_s3, 256 }
  0x5a   : > { %p1242_p4 = scmp.ne.s32.totalorder %s1810_s3, %s1241_s22  ;;  %p1849_p1 = scmp.ne.s32.totalorder %s1846_s29, 0 }
  0x5b   : > { %p1248_p0 = scmp.lt.u32.totalorder %s1241_s22, %s1810_s3 }
  0x5c   : > { %p1243_p5 = pneg %p1849_p1 }
  0x5e   : > { %p1244_p7 = pnand %p1243_p5, %p1242_p4 }
  0x60   : > { %p1245_p11 = pneg %p1244_p7 }
  0x62   : > { %p1250_p2 = pnand %p1248_p0, %p1245_p11 }
  0x64   : > { %1253 = shalt.err (!%p1250_p2)
}
  0x65   : > { %s1254_s25 = scalar_lea.vmem %s1534_s14, 256  ;;  %p1262_p3 = scmp.lt.s32.totalorder %s1534_s14, %s1534_s14 }
  0x66   : > { %p1255_p12 = scmp.ne.s32.totalorder %s1534_s14, %s1254_s25  ;;  %p1263_p9 = scmp.lt.s32.totalorder %s1254_s25, %s1254_s25 }
  0x68   : > { %p1257_p10 = pnand %p1255_p12, %p1243_p5  ;;  %p1264_p6 = por %p1263_p9, %p1262_p3 }
  0x6a   : > { %p1258_p13 = pneg %p1257_p10 }
  0x6c   : > { %p1265_p8 = pnand %p1264_p6, %p1258_p13 }
  0x6e   : > { %1268 = shalt.err (!%p1265_p8)
}
  0x6f   : > { %1091 = dma.hbm_to_vmem [thread:$0]  (!%p1849_p1), %s1810_s3, 256, %s1534_s14, [#allocation9], %s1848_s5, %s1848_s5, %s1847_s1  }
  0x70   : > { %s228_s19 = scalar_lea.vmem [#allocation7], %s1451_s24  ;;  %s1269_s27 = scalar_lea.hbm %s1586_s0, 1024 }
  0x71   : > { %s236_s6 = sshll.u32 %s228_s19, 4  ;;  %p1270_p6 = scmp.ne.s32.totalorder %s1586_s0, %s1269_s27  ;;  %s1613_s6 = int_to_ptr.vmem [resolvable:$true] %s236_s6 }
  0x72   : > { %p1850_p8 = scmp.ne.s32.totalorder %s1838_s9, 0  ;;  %s1274_s13 = scalar_lea.hbm %s1809_s2, 2048 }
  0x73   : > { %p1275_p7 = scmp.lt.u32.totalorder %s1586_s0, %s1809_s2  ;;  %p1276_p11 = scmp.lt.u32.totalorder %s1274_s13, %s1269_s27 }
  0x74   : > { %p1272_p4 = pnand %p1270_p6, %p1850_p8  ;;  %p1278_p1 = scmp.lt.u32.totalorder %s1269_s27, %s1586_s0 }
  0x75   : > { %p1277_p0 = por %p1276_p11, %p1275_p7 }
  0x76   : > { %p1273_p5 = pneg %p1272_p4 }
  0x77   : > { %p1279_p2 = por %p1278_p1, %p1277_p0 }
  0x79   : > { %p1280_p12 = pnand %p1279_p2, %p1273_p5 }
  0x7b   : > { %1283 = shalt.err (!%p1280_p12)
}
  0x7c   : > { %s1284_s24 = scalar_lea.vmem %s1613_s6, 1024  ;;  %s1380_s14 = smov [#allocation7]  }
  0x7d   : > { %p1285_p10 = scmp.ne.s32.totalorder %s1613_s6, %s1284_s24  ;;  %s1289_s23 = sshll.u32 %s1380_s14, 4  ;;  %s1290_s23 = int_to_ptr.vmem [resolvable:$false] %s1289_s23 }
  0x7e   : > { %s1291_s21 = scalar_lea.vmem %s1290_s23, 2048  ;;  %p1292_p9 = scmp.lt.s32.totalorder %s1613_s6, %s1290_s23 }
  0x7f   : > { %p1287_p13 = pnand %p1285_p10, %p1850_p8  ;;  %p1293_p6 = scmp.lt.s32.totalorder %s1291_s21, %s1284_s24 }
  0x81   : > { %p1288_p3 = pneg %p1287_p13  ;;  %p1294_p4 = por %p1293_p6, %p1292_p9 }
  0x83   : > { %p1295_p7 = pnand %p1294_p4, %p1288_p3 }
  0x85   : > { %1298 = shalt.err (!%p1295_p7)
}
  0x86   : > { %p1851_p5 = scmp.ne.s32.totalorder %s1836_s26, 0  ;;  %p1852_p8 = scmp.ne.s32.totalorder %s1844_s12, 0 }
  0x87   : > { %s1643_s9 = sand.u32 (!%p1852_p8), 1, %s1365_s16   ;;  %p1853_p11 = scmp.ne.s32.totalorder (!%p1852_p8), %s1839_s11, 0 }
  0x88   : > { %1101 = dma.hbm_to_vmem [thread:$0]  (!%p1851_p5), %s1586_s0, 1024, %s1613_s6, %s1470_s7, %s1848_s5, %s1848_s5, %s1847_s1  }
  0x89   : > { %248 = sbr.rel (%p1852_p8) target bundleno = 781 (0x30d), region = 36  ;;  %s1646_s22 = sshll.u32 (!%p1852_p8), %s1643_s9, 6 }
  0x8a   : > { %s251_s26 = scalar_lea.sflag (!%p1852_p8), [#allocation3], %s1643_s9  ;;  %s1650_s25 = scalar_lea.vmem (!%p1852_p8), [#allocation2], %s1646_s22 }
  0x90   : > { %1344 = dma.done.wait (%p1853_p11), %s251_s26, 1024  }
  0x91   : > { %1346 = vsyncadd (%p1853_p11), %s251_s26, 4294966272  ;;  %s259_s0 = sand.u32 1, %s1504_s8   ;;  %s263_s12 = scalar_lea.vmem [#allocation5], %s1646_s22 }
  0x92   : > { %s260_s7 = scalar_lea.sflag [#allocation6], %s259_s0 }
  0x93   : > { %1348 = dma.done.wait (%p1853_p11), %s260_s7, 2048  }
  0x94   : > { %1350 = vsyncadd (%p1853_p11), %s260_s7, 4294965248  ;;  %s1663_s1 = scalar_lea.vmem [#allocation7], %s1646_s22  ;;  %p1854_p0 = scmp.eq.s32.totalorder %s1504_s8, 0 }
  0x96   : > { %1352 = dma.done.wait (%p1854_p0), [#allocation9], 256   ;;  %p1855_p1 = pmov %p1854_p0 }
  0x97   : > { %v1381_v0 = vmov 0.0   ;;  %vm1382_vm0 = vmmov 0   ;;  %v324_v1 = vld [vmem:[%s263_s12] sm:$0xff]  ;;  %v325_v2 = vld [vmem:[%s263_s12 + $0x8] sm:$0xff]  ;;  %vm358_vm1 = vcmask 130048   ;;  %v326_v3 = vld [vmem:[%s263_s12 + $0x10] sm:$0xff] }
  0x98   : > { %1354 = vsyncadd (%p1855_p1), [#allocation9], 4294967040  ;;  %1028 = vmatprep.subr.bf16.mxu0 %v1381_v0  ;;  %1034 = vmatprep.subr.bf16.mxu1 %v1381_v0  ;;  %v352_v4 = vpack.c.bf16 %v325_v2, %v324_v1  ;;  %v327_v5 = vld [vmem:[%s263_s12 + $0x18] sm:$0xff]  ;;  %v316_v6 = vld [vmem:[%s1650_s25] sm:$0xff]  ;;  %s1738_s11 = scalar_lea.vmem [#allocation10], %s1646_s22  ;;  %s1011_s5 = sshll.u32 %s1504_s8, 10 }
  0x99   : > { %1030 = vmatprep.mubr.msk.bf16.mxu0 %vm1382_vm0, %v1381_v0  ;;  %1036 = vmatprep.mubr.msk.bf16.mxu1 %vm1382_vm0, %v1381_v0  ;;  %v317_v7 = vld [vmem:[%s1650_s25 + $0x8] sm:$0xff]  ;;  %v353_v8 = vpack.c.bf16 %v327_v5, %v326_v3  ;;  %v318_v9 = vld [vmem:[%s1650_s25 + $0x10] sm:$0xff]  ;;  %v319_v10 = vld [vmem:[%s1650_s25 + $0x18] sm:$0xff]  ;;  %v340_v13 = vmul.f32 0.25, %v316_v6  ;;  %s842_s17 = sshll.u32 %s1738_s11, 4  ;;  %s1755_s6 = scalar_lea.hbm %s1811_s4, %s1011_s5  ;;  %s1757_s17 = int_to_ptr.vmem [resolvable:$true] %s842_s17 }
  0x9a   : > { %v328_v11 = vld [vmem:[%s263_s12 + $0x20] sm:$0xff]  ;;  %v363_v12 = vsel %vm358_vm1, %v352_v4, 0  ;;  %v341_v14 = vmul.f32 0.25, %v317_v7  ;;  %v329_v15 = vld [vmem:[%s263_s12 + $0x28] sm:$0xff]  ;;  %v330_v16 = vld [vmem:[%s263_s12 + $0x30] sm:$0xff]  ;;  %v342_v19 = vmul.f32 0.25, %v318_v9 }
  0x9b   : > { %v331_v17 = vld [vmem:[%s263_s12 + $0x38] sm:$0xff]  ;;  %1029 = vmatpush3.bf16.xpose.msra.mxu0 %v363_v12  ;;  %v410_v18 = vsel %vm358_vm1, %v353_v8, 0  ;;  %v343_v20 = vmul.f32 0.25, %v319_v10  ;;  %v354_v21 = vpack.c.bf16 %v329_v15, %v328_v11  ;;  %v320_v25 = vld [vmem:[%s1650_s25 + $0x20] sm:$0xff]  ;;  %v321_v26 = vld [vmem:[%s1650_s25 + $0x28] sm:$0xff]  ;;  %s828_s8 = scalar_lea.sflag [#allocation4], %s1643_s9 }
  0x9c   : > { %1035 = vmatpush3.bf16.xpose.msra.mxu1 %v410_v18  ;;  %1040 = vmatprep.subr.bf16.mxu0 %v1381_v0  ;;  %v355_v22 = vpack.c.bf16 %v331_v17, %v330_v16  ;;  %v348_v23 = vpack.c.bf16 %v341_v14, %v340_v13  ;;  %v322_v28 = vld [vmem:[%s1650_s25 + $0x30] sm:$0xff]  ;;  %v323_v29 = vld [vmem:[%s1650_s25 + $0x38] sm:$0xff]  ;;  %v344_v31 = vmul.f32 0.25, %v320_v25  ;;  %v345_v32 = vmul.f32 0.25, %v321_v26  ;;  %v356_v37 = vld [vmem:[#allocation8] sm:$0xff]  ;;  %s1299_s27 = scalar_lea.vmem %s1757_s17, 1024 }
  0x9d   : > { %1046 = vmatprep.subr.bf16.mxu1 %v1381_v0  ;;  %v349_v24 = vpack.c.bf16 %v343_v20, %v342_v19  ;;  %v457_v27 = vsel %vm358_vm1, %v354_v21, 0  ;;  %v346_v33 = vmul.f32 0.25, %v322_v28  ;;  %v347_v34 = vmul.f32 0.25, %v323_v29  ;;  %v357_v39 = vld [vmem:[#allocation8 + $0x8] sm:$0xff]  ;;  %v332_v8 = vld [vmem:[%s1663_s1] sm:$0xff]  ;;  %v334_v10 = vld [vmem:[%s1663_s1 + $0x10] sm:$0xff]  ;;  %p1300_p2 = scmp.ne.s32.totalorder %s1757_s17, %s1299_s27 }
  0x9e   : > { %v504_v30 = vsel %vm358_vm1, %v355_v22, 0  ;;  %v350_v35 = vpack.c.bf16 %v345_v32, %v344_v31  ;;  %v333_v9 = vld [vmem:[%s1663_s1 + $0x8] sm:$0xff]  ;;  %v335_v12 = vld [vmem:[%s1663_s1 + $0x18] sm:$0xff]  ;;  %p1856_p12 = scmp.ne.s32.totalorder %s1841_s30, 0  ;;  %s1383_s29 = smov [#allocation10]  }
  0x9f   : > { %v351_v36 = vpack.c.bf16 %v347_v34, %v346_v33  ;;  %v623_v11 = vpack.c.bf16 %v333_v9, %v332_v8  ;;  %v624_v13 = vpack.c.bf16 %v335_v12, %v334_v10  ;;  %s1303_s10 = sshll.u32 %s1383_s29, 4  ;;  %s1304_s10 = int_to_ptr.vmem [resolvable:$false] %s1303_s10 }
  0xa0   : > { %p1301_p10 = pnand %p1300_p2, %p1856_p12  ;;  %s1305_s13 = scalar_lea.vmem %s1304_s10, 2048 }
  0xa1   : > { %p1306_p3 = scmp.lt.s32.totalorder %s1757_s17, %s1304_s10  ;;  %p1307_p9 = scmp.lt.s32.totalorder %s1305_s13, %s1299_s27 }
  0xa2   : > { %1031 = vmatmul.mubr.msk.bf16.vlgmr.msra.gmra.mrb[0].mxu0 %vm358_vm1, %v348_v23  ;;  %p1302_p13 = pneg %p1301_p10 }
  0xa3   : > { %1037 = vmatmul.mubr.msk.bf16.vlgmr.msra.gmra.mrb[0].mxu1 %vm358_vm1, %v349_v24  ;;  %1041 = vmatpush3.bf16.xpose.msra.mxu0 %v457_v27  ;;  %p1308_p6 = por %p1307_p9, %p1306_p3 }
  0xa4   : > { %1047 = vmatpush3.bf16.xpose.msra.mxu1 %v504_v30  ;;  %1042 = vmatprep.mubr.msk.bf16.mxu0 %vm1382_vm0, %v1381_v0 }
  0xa5   : > { %1048 = vmatprep.mubr.msk.bf16.mxu1 %vm1382_vm0, %v1381_v0  ;;  %1052 = vmatprep.subr.bf16.mxu0 %v1381_v0  ;;  %p1309_p4 = pnand %p1308_p6, %p1302_p13 }
  0xa6   : > { %1058 = vmatprep.subr.bf16.mxu1 %v1381_v0 }
  0xaa   : > { %1043 = vmatmul.mubr.msk.bf16.vlgmr.msra.gmra.mrb[4].mxu0 %vm358_vm1, %v350_v35 }
  0xab   : > { %1049 = vmatmul.mubr.msk.bf16.vlgmr.msra.gmra.mrb[4].mxu1 %vm358_vm1, %v351_v36  ;;  %1054 = vmatprep.mubr.msk.bf16.mxu0 %vm1382_vm0, %v1381_v0 }
  0xac   : > { %1060 = vmatprep.mubr.msk.bf16.mxu1 %vm1382_vm0, %v1381_v0  ;;  %1053 = vmatpush3.bf16.msra.mxu0 %v623_v11 }
  0xad   : > { %1059 = vmatpush3.bf16.msra.mxu1 %v624_v13  ;;  %1064 = vmatprep.subr.bf16.mxu0 %v1381_v0 }
  0xae   : > { %1070 = vmatprep.subr.bf16.mxu1 %v1381_v0 }
 0x175   : > { %v399_v38 = vpop.f32.mrb[0].mxu0 }
 0x176   : > { %v400_v40 = vadd.f32 %v399_v38, %v356_v37  ;;  %v446_v41 = vpop.f32.mrb[0].mxu1  ;;  %v1032_v42 = vpop.f32.mrb[1].mxu0 }
 0x177   : > { %v447_v43 = vadd.f32 %v446_v41, %v356_v37  ;;  %v1038_v44 = vpop.f32.mrb[1].mxu1  ;;  %v402_v45 = vpop.f32.mrb[2].mxu0 }
 0x178   : > { %v403_v46 = vadd.f32 %v402_v45, %v357_v39  ;;  %v449_v47 = vpop.f32.mrb[2].mxu1  ;;  %v1033_v48 = vpop.f32.mrb[3].mxu0  ;;  %v547_v49 = vsel %vm358_vm1, %v400_v40, -inf  ;;  %v339_v44 = vld [vmem:[%s1663_s1 + $0x38] sm:$0xff] }
 0x179   : > { %v450_v50 = vadd.f32 %v449_v47, %v357_v39  ;;  %v1039_v51 = vpop.f32.mrb[3].mxu1  ;;  %v553_v52 = vsel %vm358_vm1, %v447_v43, -inf  ;;  %548 = vmax.xlane.f32.xlu0 %v547_v49 }
 0x17a   : > { %554 = vmax.xlane.f32.xlu1 %v553_v52  ;;  %v550_v53 = vsel %vm358_vm1, %v403_v46, -inf }
 0x17b   : > { %v556_v54 = vsel %vm358_vm1, %v450_v50, -inf }
 0x17d   : > { %551 = vmax.xlane.f32.xlu0 %v550_v53  ;;  %v493_v55 = vpop.f32.mrb[4].mxu0 }
 0x17e   : > { %557 = vmax.xlane.f32.xlu1 %v556_v54  ;;  %v494_v56 = vadd.f32 %v493_v55, %v356_v37  ;;  %v1044_v57 = vpop.f32.mrb[5].mxu0  ;;  %v540_v58 = vpop.f32.mrb[4].mxu1 }
 0x17f   : > { %v496_v59 = vpop.f32.mrb[6].mxu0  ;;  %v541_v60 = vadd.f32 %v540_v58, %v356_v37  ;;  %v1050_v61 = vpop.f32.mrb[5].mxu1 }
 0x180   : > { %v497_v62 = vadd.f32 %v496_v59, %v357_v39  ;;  %v1045_v63 = vpop.f32.mrb[7].mxu0  ;;  %v543_v1 = vpop.f32.mrb[6].mxu1  ;;  %v559_v2 = vsel %vm358_vm1, %v494_v56, -inf }
 0x181   : > { %560 = vmax.xlane.f32.xlu0 %v559_v2  ;;  %v1051_v3 = vpop.f32.mrb[7].mxu1  ;;  %v544_v4 = vadd.f32 %v543_v1, %v357_v39  ;;  %v565_v6 = vsel %vm358_vm1, %v541_v60, -inf  ;;  %v336_v39 = vld [vmem:[%s1663_s1 + $0x20] sm:$0xff] }
 0x182   : > { %v562_v5 = vsel %vm358_vm1, %v497_v62, -inf }
 0x183   : > { %563 = vmax.xlane.f32.xlu1 %v562_v5  ;;  %v568_v7 = vsel %vm358_vm1, %v544_v4, -inf }
 0x185   : > { %566 = vmax.xlane.f32.xlu0 %v565_v6 }
 0x187   : > { %569 = vmax.xlane.f32.xlu1 %v568_v7 }
 0x206   : > { %v549_v14 = vpop.xlane.xlu0 %548 }
 0x207   : > { %v555_v15 = vpop.xlane.xlu1 %554  ;;  %v571_v16 = vsub.f32 %v400_v40, %v549_v14  ;;  %v337_v40 = vld [vmem:[%s1663_s1 + $0x28] sm:$0xff] }
 0x208   : > { %v573_v17 = vsub.f32 %v447_v43, %v555_v15  ;;  %v338_v43 = vld [vmem:[%s1663_s1 + $0x30] sm:$0xff] }
 0x209   : > { %v579_v18 = vmul.f32 1.442695, %v571_v16  ;;  %v626_v51 = vpack.c.bf16 %v339_v44, %v338_v43 }
 0x20a   : > { %v583_v19 = vmul.f32 1.442695, %v573_v17  ;;  %v552_v20 = vpop.xlane.xlu0 %551 }
 0x20b   : > { %1149 = vpow2.f32 %v579_v18  ;;  %v558_v21 = vpop.xlane.xlu1 %557  ;;  %v572_v22 = vsub.f32 %v403_v46, %v552_v20  ;;  %v625_v46 = vpack.c.bf16 %v337_v40, %v336_v39 }
 0x20c   : > { %v574_v23 = vsub.f32 %v450_v50, %v558_v21  ;;  %1151 = vpow2.f32 %v583_v19 }
 0x20d   : > { %v581_v24 = vmul.f32 1.442695, %v572_v22 }
 0x20e   : > { %v585_v25 = vmul.f32 1.442695, %v574_v23  ;;  %v561_v26 = vpop.xlane.xlu0 %560 }
 0x20f   : > { %1153 = vpow2.f32 %v581_v24  ;;  %v575_v27 = vsub.f32 %v494_v56, %v561_v26 }
 0x210   : > { %1155 = vpow2.f32 %v585_v25  ;;  %v564_v28 = vpop.xlane.xlu1 %563 }
 0x211   : > { %v587_v29 = vmul.f32 1.442695, %v575_v27  ;;  %v576_v30 = vsub.f32 %v497_v62, %v564_v28 }
 0x212   : > { %v567_v31 = vpop.xlane.xlu0 %566 }
 0x213   : > { %1157 = vpow2.f32 %v587_v29  ;;  %v589_v32 = vmul.f32 1.442695, %v576_v30  ;;  %v577_v33 = vsub.f32 %v541_v60, %v567_v31 }
 0x214   : > { %v570_v34 = vpop.xlane.xlu1 %569 }
 0x215   : > { %v1150_v35 = vpop.eup %1149  ;;  %1159 = vpow2.f32 %v589_v32  ;;  %v591_v36 = vmul.f32 1.442695, %v577_v33  ;;  %v578_v37 = vsub.f32 %v544_v4, %v570_v34 }
 0x216   : > { %v595_v38 = vsel %vm358_vm1, %v1150_v35, 0.0  ;;  %v1152_v41 = vpop.eup %1151 }
 0x217   : > { %1161 = vpow2.f32 %v591_v36  ;;  %v593_v42 = vmul.f32 1.442695, %v578_v37  ;;  %596 = vadd.xlane.f32.xlu0 %v595_v38  ;;  %v601_v48 = vsel %vm358_vm1, %v1152_v41, 0.0 }
 0x219   : > { %v1154_v45 = vpop.eup %1153  ;;  %1163 = vpow2.f32 %v593_v42 }
 0x21a   : > { %v1156_v47 = vpop.eup %1155  ;;  %v598_v49 = vsel %vm358_vm1, %v1154_v45, 0.0  ;;  %v619_v50 = vpack.c.bf16 %v1154_v45, %v1150_v35 }
 0x21b   : > { %602 = vadd.xlane.f32.xlu0 %v601_v48  ;;  %599 = vadd.xlane.f32.xlu1 %v598_v49  ;;  %v620_v52 = vpack.c.bf16 %v1156_v47, %v1152_v41  ;;  %v604_v55 = vsel %vm358_vm1, %v1156_v47, 0.0 }
 0x21c   : > { %1055 = vmatmul.mubr.msk.bf16.vlgmr.msra.gmra.mrb[8].mxu0 %vm358_vm1, %v619_v50 }
 0x21d   : > { %v1158_v53 = vpop.eup %1157  ;;  %1061 = vmatmul.mubr.msk.bf16.vlgmr.msra.gmra.mrb[8].mxu1 %vm358_vm1, %v620_v52  ;;  %1065 = vmatpush3.bf16.msra.mxu0 %v625_v46 }
 0x21e   : > { %1071 = vmatpush3.bf16.msra.mxu1 %v626_v51  ;;  %v607_v54 = vsel %vm358_vm1, %v1158_v53, 0.0  ;;  %1066 = vmatprep.mubr.msk.bf16.mxu0 %vm1382_vm0, %v1381_v0 }
 0x21f   : > { %v1160_v56 = vpop.eup %1159  ;;  %608 = vadd.xlane.f32.xlu0 %v607_v54  ;;  %605 = vadd.xlane.f32.xlu1 %v604_v55 }
 0x220   : > { %1072 = vmatprep.mubr.msk.bf16.mxu1 %vm1382_vm0, %v1381_v0  ;;  %v610_v59 = vsel %vm358_vm1, %v1160_v56, 0.0  ;;  %v621_v60 = vpack.c.bf16 %v1160_v56, %v1158_v53 }
 0x221   : > { %v1162_v57 = vpop.eup %1161 }
 0x222   : > { %v613_v58 = vsel %vm358_vm1, %v1162_v57, 0.0 }
 0x223   : > { %v1164_v61 = vpop.eup %1163  ;;  %614 = vadd.xlane.f32.xlu0 %v613_v58  ;;  %611 = vadd.xlane.f32.xlu1 %v610_v59 }
 0x224   : > { %1067 = vmatmul.mubr.msk.bf16.vlgmr.msra.gmra.mrb[12].mxu0 %vm358_vm1, %v621_v60  ;;  %v622_v62 = vpack.c.bf16 %v1164_v61, %v1162_v57  ;;  %v616_v63 = vsel %vm358_vm1, %v1164_v61, 0.0 }
 0x226   : > { %1073 = vmatmul.mubr.msk.bf16.vlgmr.msra.gmra.mrb[12].mxu1 %vm358_vm1, %v622_v62 }
 0x227   : > { %617 = vadd.xlane.f32.xlu1 %v616_v63 }
 0x2a4   : > { %v597_v1 = vpop.xlane.xlu0 %596 }
 0x2a5   : > { %1165 = vrcp.f32 %v597_v1 }
 0x2a8   : > { %v600_v2 = vpop.xlane.xlu1 %599  ;;  %v603_v0 = vpop.xlane.xlu0 %602 }
 0x2a9   : > { %1167 = vrcp.f32 %v603_v0 }
 0x2aa   : > { %1169 = vrcp.f32 %v600_v2 }
 0x2ac   : > { %v606_v3 = vpop.xlane.xlu1 %605  ;;  %v609_v4 = vpop.xlane.xlu0 %608 }
 0x2ad   : > { %1171 = vrcp.f32 %v606_v3 }
 0x2ae   : > { %1173 = vrcp.f32 %v609_v4 }
 0x2af   : > { %v1166_v8 = vpop.eup %1165 }
 0x2b0   : > { %v612_v5 = vpop.xlane.xlu1 %611  ;;  %v615_v6 = vpop.xlane.xlu0 %614 }
 0x2b1   : > { %1175 = vrcp.f32 %v615_v6 }
 0x2b2   : > { %1177 = vrcp.f32 %v612_v5 }
 0x2b3   : > { %v1168_v10 = vpop.eup %1167 }
 0x2b4   : > { %v618_v7 = vpop.xlane.xlu1 %617  ;;  %v1170_v14 = vpop.eup %1169 }
 0x2b5   : > { %1179 = vrcp.f32 %v618_v7 }
 0x2b7   : > { %v1172_v18 = vpop.eup %1171 }
 0x2b8   : > { %v1174_v24 = vpop.eup %1173 }
 0x2bb   : > { %v1176_v26 = vpop.eup %1175 }
 0x2bc   : > { %v1178_v29 = vpop.eup %1177 }
 0x2bf   : > { %v1180_v36 = vpop.eup %1179 }
 0x2ef   : > { %v664_v9 = vpop.f32.mrb[8].mxu0 }
 0x2f0   : > { %v811_v11 = vmul.f32 %v1166_v8, %v664_v9  ;;  %v708_v12 = vpop.f32.mrb[8].mxu1  ;;  %v1056_v13 = vpop.f32.mrb[9].mxu0 }
 0x2f1   : > { %v813_v15 = vmul.f32 %v1168_v10, %v708_v12  ;;  %v1062_v16 = vpop.f32.mrb[9].mxu1  ;;  %v667_v17 = vpop.f32.mrb[10].mxu0 }
 0x2f2   : > { %819 = vst.msk [vmem:[%s1738_s11] sm:$0xff] %vm358_vm1, %v811_v11  ;;  %v812_v19 = vmul.f32 %v1170_v14, %v667_v17  ;;  %v711_v20 = vpop.f32.mrb[10].mxu1  ;;  %v1057_v21 = vpop.f32.mrb[11].mxu0 }
 0x2f3   : > { %821 = vst.msk [vmem:[%s1738_s11 + $0x10] sm:$0xff] %vm358_vm1, %v813_v15  ;;  %v814_v22 = vmul.f32 %v1172_v18, %v711_v20  ;;  %v1063_v23 = vpop.f32.mrb[11].mxu1 }
 0x2f4   : > { %820 = vst.msk [vmem:[%s1738_s11 + $0x8] sm:$0xff] %vm358_vm1, %v812_v19 }
 0x2f5   : > { %822 = vst.msk [vmem:[%s1738_s11 + $0x18] sm:$0xff] %vm358_vm1, %v814_v22 }
 0x2f7   : > { %v752_v25 = vpop.f32.mrb[12].mxu0 }
 0x2f8   : > { %v815_v27 = vmul.f32 %v1174_v24, %v752_v25  ;;  %v1068_v28 = vpop.f32.mrb[13].mxu0 }
 0x2f9   : > { %v755_v30 = vpop.f32.mrb[14].mxu0  ;;  %v796_v31 = vpop.f32.mrb[12].mxu1 }
 0x2fa   : > { %823 = vst.msk [vmem:[%s1738_s11 + $0x20] sm:$0xff] %vm358_vm1, %v815_v27  ;;  %v816_v32 = vmul.f32 %v1178_v29, %v755_v30  ;;  %v817_v33 = vmul.f32 %v1176_v26, %v796_v31  ;;  %v1069_v34 = vpop.f32.mrb[15].mxu0  ;;  %v1074_v35 = vpop.f32.mrb[13].mxu1 }
 0x2fb   : > { %v799_v37 = vpop.f32.mrb[14].mxu1 }
 0x2fc   : > { %824 = vst.msk [vmem:[%s1738_s11 + $0x28] sm:$0xff] %vm358_vm1, %v816_v32  ;;  %825 = vst.msk [vmem:[%s1738_s11 + $0x30] sm:$0xff] %vm358_vm1, %v817_v33  ;;  %v818_v38 = vmul.f32 %v1180_v36, %v799_v37  ;;  %v1075_v39 = vpop.f32.mrb[15].mxu1 }
 0x2fe   : > { %826 = vst.msk [vmem:[%s1738_s11 + $0x38] sm:$0xff] %vm358_vm1, %v818_v38 }
 0x2ff   : > { %1312 = shalt.err (!%p1309_p4)
}
 0x300   : > { %s1313_s28 = scalar_lea.hbm %s1755_s6, 1024  ;;  %s1317_s14 = scalar_lea.hbm %s1811_s4, 2048 }
 0x301   : > { %p1314_p7 = scmp.ne.s32.totalorder %s1755_s6, %s1313_s28  ;;  %p1318_p11 = scmp.lt.u32.totalorder %s1755_s6, %s1811_s4 }
 0x302   : > { %p1319_p0 = scmp.lt.u32.totalorder %s1317_s14, %s1313_s28  ;;  %p1321_p2 = scmp.lt.u32.totalorder %s1313_s28, %s1755_s6 }
 0x303   : > { %p1315_p5 = pnand %p1314_p7, %p1856_p12 }
 0x304   : > { %p1320_p1 = por %p1319_p0, %p1318_p11 }
 0x305   : > { %p1316_p8 = pneg %p1315_p5 }
 0x306   : > { %p1322_p10 = por %p1321_p2, %p1320_p1 }
 0x308   : > { %p1323_p13 = pnand %p1322_p10, %p1316_p8 }
 0x30a   : > { %1326 = shalt.err (!%p1323_p13)
}
 0x30b   : > { %s1384_s22 = smov 128   ;;  %s1385_s26 = smov 8  }
 0x30c   : > { %1086 = dma.vmem_to_hbm [thread:$0]  (%p1856_p12), %s1757_s17, 1024, %s1755_s6, %s828_s8, %s1384_s22, %s1384_s22, %s1385_s26  }
 0x30d PF: > { %s1857_s25 = sld [smem:[#allocation19_spill]]  ;;  %s1858_s0 = sld [smem:[#allocation16_spill]] }
 0x30e   : > { %s857_s7 = sand.u32 1, %s1361_s15  }
 0x30f   : > { %s858_s12 = scalar_lea.sflag [#allocation4], %s857_s7 }
 0x313   : > { %p1859_p3 = scmp.ne.s32.totalorder %s1857_s25, 0  ;;  %p1860_p9 = scmp.ge.s32.totalorder %s1858_s0, 2 }
 0x315   : > { %p1103_p6 = pnand %p1860_p9, %p1859_p3 }
 0x317   : > { %1356 = dma.done.wait (!%p1103_p6), %s858_s12, 1024  }
 0x318   : > { %1358 = vsyncadd (!%p1103_p6), %s858_s12, 4294966272  ;;  %s1861_s18 = sld [smem:[#allocation17_spill]]  ;;  %s1862_s1 = sld [smem:[#allocation15_spill]] }
 0x319   : > { %s1863_s17 = sld [smem:[#allocation18_spill]]  ;;  %s1864_s15 = smov %s1365_s16 }
 0x31e   : > { %p21_p4 = scmp.ge.s32.totalorder %s1861_s18, 4   ;;  %s1865_s16 = smov %s1862_s1 }
 0x320   :  { %23 = sbr.rel (!%p21_p4) target bundleno = 11 (0xb), region = 109 }
 0x327   :  { %863 = vsyncpa [#allocation3], 1 }
 0x328   :  { %865 = vsyncpa [#allocation3 + $0x1], 1 }
 0x329   :  { %866 = vsyncpa [#allocation6], 1 }
 0x32a   :  { %868 = vsyncpa [#allocation6 + $0x1], 1 }
 0x32b   :  { %869 = vsyncpa [#allocation9], 1 }
 0x32c   :  { %870 = vsyncpa [#allocation4], 1 }
 0x32d   :  { %872 = vsyncpa [#allocation4 + $0x1], 1 }

</bundles_post_ra>
